<compile_context>
chip_gen: v7x
topology: tpu7x:2x2x1
jax: 0.10.0
libtpu: 0.0.40
codegen_flags: <defaults>
</compile_context>

<pallas_src>
import jax
import jax.numpy as jnp
from jax.experimental import pallas as pl
from jax.experimental.pallas import tpu as pltpu

INPUT_SIZE = 784
NUM_CLASSES = 10


def _logreg_kernel(x_ref, w_ref, b_ref, o_ref):
    # x_ref: (TB, K) f32, w_ref: (K, N) f32, b_ref: (1, N) f32, o_ref: (TB, N) f32
    z = jnp.dot(x_ref[...], w_ref[...], preferred_element_type=jnp.float32)
    z = z + b_ref[...]                       # broadcast (1, N) over the batch tile
    # Symmetric sigmoid: exp argument is always <= 0 so it never overflows.
    e = jnp.exp(jnp.where(z > 0, -z, z))
    o_ref[...] = jnp.where(z > 0, 1.0 / (1.0 + e), e / (1.0 + e))


def _round_up(v, m):
    return ((v + m - 1) // m) * m


def logistic_regression(x, w, b, *, tb_max=1024):
    """x: (B, input_size) f32, w: (input_size, num_classes) f32, b: (num_classes,) f32."""
    B, K = x.shape
    Kw, N = w.shape
    assert Kw == K

    # Balanced batch tiling: tiles of equal size (multiple of 8 sublanes), so the
    # padding waste is at most 8 * num_tiles rows instead of up to tb-1 rows.
    num_tiles = max(1, pl.cdiv(B, tb_max))
    tb = _round_up(max(1, pl.cdiv(B, num_tiles)), 8)
    B_pad = tb * num_tiles

    x = x.astype(jnp.float32)
    w = w.astype(jnp.float32)
    b2 = b.astype(jnp.float32).reshape(1, N)
    if B_pad != B:
        x = jnp.pad(x, ((0, B_pad - B), (0, 0)))

    # Advisory cost for XLA scheduling — true (unpadded-K/N) numbers.
    cost = pl.CostEstimate(
        flops=2 * B_pad * K * N,
        transcendentals=B_pad * N,
        bytes_accessed=4 * (B_pad * K + K * N + N + B_pad * N),
    )

    out = pl.pallas_call(
        _logreg_kernel,
        out_shape=jax.ShapeDtypeStruct((B_pad, N), jnp.float32),
        grid_spec=pltpu.PrefetchScalarGridSpec(
            num_scalar_prefetch=0,
            grid=(num_tiles,),
            in_specs=[
                pl.BlockSpec((tb, K), lambda i: (i, 0)),   # x tile streams over batch
                pl.BlockSpec((K, N), lambda i: (0, 0)),    # weights resident in VMEM
                pl.BlockSpec((1, N), lambda i: (0, 0)),    # bias resident in VMEM
            ],
            out_specs=pl.BlockSpec((tb, N), lambda i: (i, 0)),
        ),
        compiler_params=pltpu.CompilerParams(
            dimension_semantics=("parallel",),   # shard batch tiles across TCs on v7x
        ),
        cost_estimate=cost,
    )(x, w, b2)

    return out[:B] if B_pad != B else out


if __name__ == "__main__":
    key = jax.random.PRNGKey(0)
    kx, kw, kb = jax.random.split(key, 3)

    # Deterministic parameter init (mimics nn.Linear's uniform(-1/sqrt(fan_in), 1/sqrt(fan_in)))
    bound = 1.0 / jnp.sqrt(jnp.float32(INPUT_SIZE))
    w = jax.random.uniform(kw, (INPUT_SIZE, NUM_CLASSES), jnp.float32, -bound, bound)
    b = jax.random.uniform(kb, (NUM_CLASSES,), jnp.float32, -bound, bound)

    # Check both the aligned (multiple-of-8) and ragged batch paths.
    for batch in (8, 5):
        x = jax.random.normal(jax.random.fold_in(kx, batch), (batch, INPUT_SIZE), jnp.float32)
        out = jax.block_until_ready(logistic_regression(x, w, b))
        ref = jax.nn.sigmoid(x @ w + b)
        assert out.shape == (batch, NUM_CLASSES)
        assert jnp.allclose(out, ref, atol=1e-5, rtol=1e-5)

    print("KERNEL_OK")
</pallas_src>

<mosaic_0001>
module attributes {stable_mosaic.version = 11 : i64} {
  func.func @_logreg_kernel(%arg0: i32, %arg1: memref<8x784xf32, #tpu.memory_space<vmem>>, %arg2: memref<784x10xf32, #tpu.memory_space<vmem>>, %arg3: memref<1x10xf32, #tpu.memory_space<vmem>>, %arg4: memref<8x10xf32, #tpu.memory_space<vmem>>) attributes {dimension_semantics = [#tpu.dimension_semantics<parallel>], iteration_bounds = array<i64: 1>, scalar_prefetch = 0 : i64, scratch_operands = 0 : i64, tpu.core_type = #tpu.core_type<tc>, window_params = [{transform_indices = @transform_0, window_bounds = array<i64: 8, 784>}, {pipeline_mode = #tpu.pipeline_mode<synchronous>, transform_indices = @transform_1, window_bounds = array<i64: 784, 10>}, {pipeline_mode = #tpu.pipeline_mode<synchronous>, transform_indices = @transform_2, window_bounds = array<i64: 1, 10>}, {transform_indices = @transform_3, window_bounds = array<i64: 8, 10>}]} {
    %c0 = arith.constant 0 : index
    %c0_0 = arith.constant 0 : index
    %0 = vector.load %arg1[%c0, %c0_0] : memref<8x784xf32, #tpu.memory_space<vmem>>, vector<8x784xf32>
    %c0_1 = arith.constant 0 : index
    %c0_2 = arith.constant 0 : index
    %1 = vector.load %arg2[%c0_1, %c0_2] : memref<784x10xf32, #tpu.memory_space<vmem>>, vector<784x10xf32>
    %cst = arith.constant dense<0.000000e+00> : vector<8x10xf32>
    %2 = tpu.matmul %0, %1, %cst {dimension_numbers = #tpu.dot_dimension_numbers<[1], [0], [0], [1], [0, 0, 1, 1], [], []>} : vector<8x784xf32>, vector<784x10xf32>, vector<8x10xf32> -> vector<8x10xf32>
    %c0_3 = arith.constant 0 : index
    %c0_4 = arith.constant 0 : index
    %3 = vector.load %arg3[%c0_3, %c0_4] : memref<1x10xf32, #tpu.memory_space<vmem>>, vector<1x10xf32>
    %4 = vector.broadcast %3 : vector<1x10xf32> to vector<8x10xf32>
    %5 = arith.addf %2, %4 : vector<8x10xf32>
    %cst_5 = arith.constant 0.000000e+00 : f32
    %6 = vector.broadcast %cst_5 : f32 to vector<8x10xf32>
    %7 = arith.cmpf ogt, %5, %6 : vector<8x10xf32>
    %cst_6 = arith.constant 0.000000e+00 : f32
    %8 = vector.broadcast %cst_6 : f32 to vector<8x10xf32>
    %9 = arith.subf %8, %5 : vector<8x10xf32>
    %10 = arith.select %7, %9, %5 : vector<8x10xi1>, vector<8x10xf32>
    %11 = math.exp %10 : vector<8x10xf32>
    %cst_7 = arith.constant 0.000000e+00 : f32
    %12 = vector.broadcast %cst_7 : f32 to vector<8x10xf32>
    %13 = arith.cmpf ogt, %5, %12 : vector<8x10xf32>
    %cst_8 = arith.constant 1.000000e+00 : f32
    %14 = vector.broadcast %cst_8 : f32 to vector<8x10xf32>
    %15 = arith.addf %14, %11 : vector<8x10xf32>
    %cst_9 = arith.constant 1.000000e+00 : f32
    %16 = vector.broadcast %cst_9 : f32 to vector<8x10xf32>
    %17 = arith.divf %16, %15 : vector<8x10xf32>
    %cst_10 = arith.constant 1.000000e+00 : f32
    %18 = vector.broadcast %cst_10 : f32 to vector<8x10xf32>
    %19 = arith.addf %18, %11 : vector<8x10xf32>
    %20 = arith.divf %11, %19 : vector<8x10xf32>
    %21 = arith.select %13, %17, %20 : vector<8x10xi1>, vector<8x10xf32>
    %c0_11 = arith.constant 0 : index
    %c0_12 = arith.constant 0 : index
    %22 = vector.load %arg4[%c0_11, %c0_12] : memref<8x10xf32, #tpu.memory_space<vmem>>, vector<8x10xf32>
    tpu.vector_store %arg4[%c0_11, %c0_12], %21 {strides = array<i32>} : memref<8x10xf32, #tpu.memory_space<vmem>>, vector<8x10xf32>,
    return
  }
  func.func @transform_0(%arg0: i32) -> (i32, i32) {
    %c0_i32 = arith.constant 0 : i32
    %c0_i32_0 = arith.constant 0 : i32
    return %arg0, %c0_i32 : i32, i32
  }
  func.func @transform_1(%arg0: i32) -> (i32, i32) {
    %c0_i32 = arith.constant 0 : i32
    %c0_i32_0 = arith.constant 0 : i32
    %c0_i32_1 = arith.constant 0 : i32
    return %c0_i32, %c0_i32_0 : i32, i32
  }
  func.func @transform_2(%arg0: i32) -> (i32, i32) {
    %c0_i32 = arith.constant 0 : i32
    %c0_i32_0 = arith.constant 0 : i32
    %c0_i32_1 = arith.constant 0 : i32
    return %c0_i32, %c0_i32_0 : i32, i32
  }
  func.func @transform_3(%arg0: i32) -> (i32, i32) {
    %c0_i32 = arith.constant 0 : i32
    %c0_i32_0 = arith.constant 0 : i32
    return %arg0, %c0_i32 : i32, i32
  }
}

</mosaic_0001>

<bundles_post_ra>
// kernel: tpu_custom_call.1
= control target key start
LH: loop header
LB: loop body
LE: loop exit
PB: predicated region body
PF: predicated region fallthrough
CT: control target
= control target key end

     0   :  { %s1039_s0 = inlined_call_operand.vmem [shape: f32[8,784], index: 0, kind: input, shape index: {}]   ;;  %s1040_s1 = inlined_call_operand.vmem [shape: f32[784,10], index: 1, kind: input, shape index: {}]   ;;  %s1041_s2 = inlined_call_operand.vmem [shape: f32[1,10], index: 2, kind: input, shape index: {}]   ;;  %s1042_s3 = inlined_call_operand.hbm [shape: f32[8,10], index: 3, kind: output, shape index: {}]  }
   0x1   :  { %v38_v0 = vld [vmem:[%s1040_s1 + $0x80] sm:$0xff]  ;;  %v39_v1 = vld [vmem:[%s1040_s1 + $0x88] sm:$0xff]  ;;  %v40_v11 = vld [vmem:[%s1040_s1 + $0x90] sm:$0xff] }
   0x2   :  { %v22_v2 = vld [vmem:[%s1040_s1] sm:$0xff]  ;;  %v554_v3 = vpack.c.bf16 %v39_v1, %v38_v0  ;;  %v23_v4 = vld [vmem:[%s1040_s1 + $0x8] sm:$0xff]  ;;  %v41_v13 = vld [vmem:[%s1040_s1 + $0x98] sm:$0xff] }
   0x3   :  { %v70_v5 = vld [vmem:[%s1040_s1 + $0x180] sm:$0xff]  ;;  %v71_v6 = vld [vmem:[%s1040_s1 + $0x188] sm:$0xff]  ;;  %v556_v7 = vpack.c.bf16 %v23_v4, %v22_v2  ;;  %v24_v14 = vld [vmem:[%s1040_s1 + $0x10] sm:$0xff]  ;;  %v558_v16 = vpack.c.bf16 %v41_v13, %v40_v11 }
   0x4   :  { %v586_v8 = vpack.c.bf16 %v71_v6, %v70_v5  ;;  %v54_v9 = vld [vmem:[%s1040_s1 + $0x100] sm:$0xff]  ;;  %v55_v10 = vld [vmem:[%s1040_s1 + $0x108] sm:$0xff]  ;;  %555 = vmatprep.subr.bf16.mxu0 %v554_v3  ;;  %v25_v15 = vld [vmem:[%s1040_s1 + $0x18] sm:$0xff] }
   0x5   :  { %v588_v12 = vpack.c.bf16 %v55_v10, %v54_v9  ;;  %557 = vmatpush3.bf16.msra.mxu0 %v556_v7  ;;  %v560_v17 = vpack.c.bf16 %v25_v15, %v24_v14  ;;  %v72_v18 = vld [vmem:[%s1040_s1 + $0x190] sm:$0xff]  ;;  %v73_v19 = vld [vmem:[%s1040_s1 + $0x198] sm:$0xff]  ;;  %v42_v23 = vld [vmem:[%s1040_s1 + $0xa0] sm:$0xff] }
   0x6   :  { %587 = vmatprep.subr.bf16.mxu1 %v586_v8  ;;  %v56_v20 = vld [vmem:[%s1040_s1 + $0x110] sm:$0xff]  ;;  %v590_v21 = vpack.c.bf16 %v73_v19, %v72_v18  ;;  %v57_v22 = vld [vmem:[%s1040_s1 + $0x118] sm:$0xff]  ;;  %v43_v24 = vld [vmem:[%s1040_s1 + $0xa8] sm:$0xff]  ;;  %559 = vmatprep.subr.bf16.mxu0 %v558_v16 }
   0x7   :  { %589 = vmatpush3.bf16.msra.mxu1 %v588_v12  ;;  %v592_v25 = vpack.c.bf16 %v57_v22, %v56_v20  ;;  %v562_v26 = vpack.c.bf16 %v43_v24, %v42_v23  ;;  %v26_v27 = vld [vmem:[%s1040_s1 + $0x20] sm:$0xff]  ;;  %v27_v28 = vld [vmem:[%s1040_s1 + $0x28] sm:$0xff]  ;;  %v44_v35 = vld [vmem:[%s1040_s1 + $0xb0] sm:$0xff] }
   0x8   :  { %v74_v29 = vld [vmem:[%s1040_s1 + $0x1a0] sm:$0xff]  ;;  %591 = vmatprep.subr.bf16.mxu1 %v590_v21  ;;  %v75_v30 = vld [vmem:[%s1040_s1 + $0x1a8] sm:$0xff]  ;;  %v564_v33 = vpack.c.bf16 %v27_v28, %v26_v27  ;;  %v45_v36 = vld [vmem:[%s1040_s1 + $0xb8] sm:$0xff] }
   0x9   :  { %v58_v31 = vld [vmem:[%s1040_s1 + $0x120] sm:$0xff]  ;;  %v59_v32 = vld [vmem:[%s1040_s1 + $0x128] sm:$0xff]  ;;  %561 = vmatpush3.bf16.msra.mxu0 %v560_v17  ;;  %v594_v34 = vpack.c.bf16 %v75_v30, %v74_v29  ;;  %v28_v37 = vld [vmem:[%s1040_s1 + $0x30] sm:$0xff]  ;;  %v566_v39 = vpack.c.bf16 %v45_v36, %v44_v35 }
   0xa   :  { %563 = vmatprep.subr.bf16.mxu0 %v562_v26  ;;  %v596_v38 = vpack.c.bf16 %v59_v32, %v58_v31  ;;  %v29_v40 = vld [vmem:[%s1040_s1 + $0x38] sm:$0xff]  ;;  %v76_v41 = vld [vmem:[%s1040_s1 + $0x1b0] sm:$0xff]  ;;  %v46_v46 = vld [vmem:[%s1040_s1 + $0xc0] sm:$0xff] }
   0xb   :  { %593 = vmatpush3.bf16.msra.mxu1 %v592_v25  ;;  %v77_v42 = vld [vmem:[%s1040_s1 + $0x1b8] sm:$0xff]  ;;  %v60_v44 = vld [vmem:[%s1040_s1 + $0x130] sm:$0xff]  ;;  %v47_v47 = vld [vmem:[%s1040_s1 + $0xc8] sm:$0xff]  ;;  %v568_v48 = vpack.c.bf16 %v29_v40, %v28_v37 }
   0xc   :  { %595 = vmatprep.subr.bf16.mxu1 %v594_v34  ;;  %v598_v43 = vpack.c.bf16 %v77_v42, %v76_v41  ;;  %v61_v45 = vld [vmem:[%s1040_s1 + $0x138] sm:$0xff]  ;;  %v78_v49 = vld [vmem:[%s1040_s1 + $0x1c0] sm:$0xff]  ;;  %v79_v50 = vld [vmem:[%s1040_s1 + $0x1c8] sm:$0xff]  ;;  %v570_v52 = vpack.c.bf16 %v47_v47, %v46_v46 }
   0xd   :  { %565 = vmatpush3.bf16.msra.mxu0 %v564_v33  ;;  %v600_v51 = vpack.c.bf16 %v61_v45, %v60_v44  ;;  %v30_v53 = vld [vmem:[%s1040_s1 + $0x40] sm:$0xff]  ;;  %v31_v54 = vld [vmem:[%s1040_s1 + $0x48] sm:$0xff]  ;;  %v602_v56 = vpack.c.bf16 %v79_v50, %v78_v49  ;;  %v48_v58 = vld [vmem:[%s1040_s1 + $0xd0] sm:$0xff]  ;;  %v685_v50 = vmov 0.0|0.0  }
   0xe   :  { %567 = vmatprep.subr.bf16.mxu0 %v566_v39  ;;  %v62_v55 = vld [vmem:[%s1040_s1 + $0x140] sm:$0xff]  ;;  %v63_v57 = vld [vmem:[%s1040_s1 + $0x148] sm:$0xff]  ;;  %v49_v59 = vld [vmem:[%s1040_s1 + $0xd8] sm:$0xff]  ;;  %v572_v62 = vpack.c.bf16 %v31_v54, %v30_v53 }
   0xf   :  { %597 = vmatpush3.bf16.msra.mxu1 %v596_v38  ;;  %v80_v60 = vld [vmem:[%s1040_s1 + $0x1d0] sm:$0xff]  ;;  %v81_v61 = vld [vmem:[%s1040_s1 + $0x1d8] sm:$0xff]  ;;  %v604_v63 = vpack.c.bf16 %v63_v57, %v62_v55  ;;  %v574_v0 = vpack.c.bf16 %v49_v59, %v48_v58  ;;  %v50_v6 = vld [vmem:[%s1040_s1 + $0xe0] sm:$0xff] }
  0x10   :  { %599 = vmatprep.subr.bf16.mxu1 %v598_v43  ;;  %v32_v1 = vld [vmem:[%s1040_s1 + $0x50] sm:$0xff]  ;;  %v33_v2 = vld [vmem:[%s1040_s1 + $0x58] sm:$0xff]  ;;  %v606_v4 = vpack.c.bf16 %v81_v61, %v80_v60  ;;  %v51_v7 = vld [vmem:[%s1040_s1 + $0xe8] sm:$0xff] }
  0x11   :  { %569 = vmatpush3.bf16.msra.mxu0 %v568_v48  ;;  %v64_v3 = vld [vmem:[%s1040_s1 + $0x150] sm:$0xff]  ;;  %v65_v5 = vld [vmem:[%s1040_s1 + $0x158] sm:$0xff]  ;;  %v82_v8 = vld [vmem:[%s1040_s1 + $0x1e0] sm:$0xff]  ;;  %v576_v10 = vpack.c.bf16 %v33_v2, %v32_v1  ;;  %v578_v14 = vpack.c.bf16 %v51_v7, %v50_v6 }
  0x12   :  { %571 = vmatprep.subr.bf16.mxu0 %v570_v52  ;;  %v83_v9 = vld [vmem:[%s1040_s1 + $0x1e8] sm:$0xff]  ;;  %v34_v11 = vld [vmem:[%s1040_s1 + $0x60] sm:$0xff]  ;;  %v608_v13 = vpack.c.bf16 %v65_v5, %v64_v3  ;;  %v52_v19 = vld [vmem:[%s1040_s1 + $0xf0] sm:$0xff] }
  0x13   :  { %601 = vmatpush3.bf16.msra.mxu1 %v600_v51  ;;  %v16_v12 = vld [vmem:[%s1039_s0 + $0x8] sm:$0xff]  ;;  %v66_v16 = vld [vmem:[%s1040_s1 + $0x160] sm:$0xff]  ;;  %v610_v18 = vpack.c.bf16 %v83_v9, %v82_v8  ;;  %v53_v20 = vld [vmem:[%s1040_s1 + $0xf8] sm:$0xff] }
  0x14   :  { %603 = vmatprep.subr.bf16.mxu1 %v602_v56  ;;  %v35_v15 = vld [vmem:[%s1040_s1 + $0x68] sm:$0xff]  ;;  %195 = vmatprep.mubr.f32.mxu0 %v16_v12  ;;  %v18_v21 = vld [vmem:[%s1039_s0 + $0x18] sm:$0xff]  ;;  %v84_v22 = vld [vmem:[%s1040_s1 + $0x1f0] sm:$0xff]  ;;  %v582_v26 = vpack.c.bf16 %v53_v20, %v52_v19 }
  0x15   :  { %573 = vmatpush3.bf16.msra.mxu0 %v572_v62  ;;  %v67_v17 = vld [vmem:[%s1040_s1 + $0x168] sm:$0xff]  ;;  %v85_v23 = vld [vmem:[%s1040_s1 + $0x1f8] sm:$0xff]  ;;  %265 = vmatprep.mubr.f32.mxu1 %v18_v21  ;;  %v580_v24 = vpack.c.bf16 %v35_v15, %v34_v11  ;;  %v36_v27 = vld [vmem:[%s1040_s1 + $0x70] sm:$0xff] }
  0x16   :  { %575 = vmatprep.subr.bf16.mxu0 %v574_v0  ;;  %v612_v25 = vpack.c.bf16 %v67_v17, %v66_v16  ;;  %v37_v28 = vld [vmem:[%s1040_s1 + $0x78] sm:$0xff]  ;;  %v68_v29 = vld [vmem:[%s1040_s1 + $0x170] sm:$0xff]  ;;  %v614_v30 = vpack.c.bf16 %v85_v23, %v84_v22  ;;  %v102_v32 = vld [vmem:[%s1040_s1 + $0x280] sm:$0xff] }
  0x17   :  { %605 = vmatpush3.bf16.msra.mxu1 %v604_v63  ;;  %v69_v31 = vld [vmem:[%s1040_s1 + $0x178] sm:$0xff]  ;;  %v103_v33 = vld [vmem:[%s1040_s1 + $0x288] sm:$0xff]  ;;  %v584_v34 = vpack.c.bf16 %v37_v28, %v36_v27  ;;  %v86_v37 = vld [vmem:[%s1040_s1 + $0x200] sm:$0xff] }
  0x18   :  { %607 = vmatprep.subr.bf16.mxu1 %v606_v4  ;;  %v616_v35 = vpack.c.bf16 %v69_v31, %v68_v29  ;;  %v618_v36 = vpack.c.bf16 %v103_v33, %v102_v32  ;;  %v87_v38 = vld [vmem:[%s1040_s1 + $0x208] sm:$0xff]  ;;  %v104_v39 = vld [vmem:[%s1040_s1 + $0x290] sm:$0xff]  ;;  %v105_v40 = vld [vmem:[%s1040_s1 + $0x298] sm:$0xff] }
  0x19   :  { %577 = vmatpush3.bf16.msra.mxu0 %v576_v10  ;;  %v15_v41 = vld [vmem:[%s1039_s0] sm:$0xff]  ;;  %v620_v42 = vpack.c.bf16 %v87_v38, %v86_v37  ;;  %v17_v43 = vld [vmem:[%s1039_s0 + $0x10] sm:$0xff]  ;;  %v622_v45 = vpack.c.bf16 %v105_v40, %v104_v39  ;;  %v89_v46 = vld [vmem:[%s1040_s1 + $0x218] sm:$0xff] }
  0x1a   :  { %579 = vmatprep.subr.bf16.mxu0 %v578_v14  ;;  %v88_v44 = vld [vmem:[%s1040_s1 + $0x210] sm:$0xff]  ;;  %v106_v47 = vld [vmem:[%s1040_s1 + $0x2a0] sm:$0xff]  ;;  %v107_v48 = vld [vmem:[%s1040_s1 + $0x2a8] sm:$0xff] }
  0x1b   :  { %609 = vmatpush3.bf16.msra.mxu1 %v608_v13  ;;  %v20_v49 = vld [vmem:[%s1039_s0 + $0x28] sm:$0xff]  ;;  %v118_v51 = vld [vmem:[%s1040_s1 + $0x300] sm:$0xff] }
  0x1c   :  { %611 = vmatprep.subr.bf16.mxu1 %v610_v18  ;;  %v119_v52 = vld [vmem:[%s1040_s1 + $0x308] sm:$0xff] }
  0x1d   :  { %581 = vmatpush3.bf16.msra.mxu0 %v580_v24  ;;  %v651_v53 = vpack.c.bf16 %v119_v52, %v118_v51 }
  0x1e   :  { %583 = vmatprep.subr.bf16.mxu0 %v582_v26 }
  0x1f   :  { %613 = vmatpush3.bf16.msra.mxu1 %v612_v25 }
  0x20   :  { %615 = vmatprep.subr.bf16.mxu1 %v614_v30 }
  0x21   :  { %585 = vmatpush3.bf16.msra.mxu0 %v584_v34 }
  0x22   :  { %619 = vmatprep.subr.bf16.mxu0 %v618_v36 }
  0x23   :  { %617 = vmatpush3.bf16.msra.mxu1 %v616_v35 }
  0x24   :  { %650 = vmatprep.subr.bf16.mxu1 %v685_v50  ;;  %196 = vmatmul.mubr.f32.vlgmr.msra.gmra.mrb[0].mxu0 %v15_v41 }
  0x25   :  { %8 = vsyncpa [#allocation3], 0  ;;  %621 = vmatpush3.bf16.msra.mxu0 %v620_v42  ;;  %v624_v54 = vpack.c.bf16 %v89_v46, %v88_v44  ;;  %v626_v55 = vpack.c.bf16 %v107_v48, %v106_v47  ;;  %v90_v56 = vld [vmem:[%s1040_s1 + $0x220] sm:$0xff]  ;;  %v91_v57 = vld [vmem:[%s1040_s1 + $0x228] sm:$0xff]  ;;  %335 = vmatprep.mubr.f32.mxu0 %v20_v49  ;;  %vm686_vm0 = vmmov 0   ;;  %v687_v60 = vmov 0.0  }
  0x26   :  { %266 = vmatmul.mubr.f32.vlgmr.msra.gmra.mrb[0].mxu1 %v17_v43  ;;  %623 = vmatprep.subr.bf16.mxu0 %v622_v45  ;;  %v108_v58 = vld [vmem:[%s1040_s1 + $0x2b0] sm:$0xff]  ;;  %v109_v59 = vld [vmem:[%s1040_s1 + $0x2b8] sm:$0xff]  ;;  %vm127_vm1 = vcmask 130048   ;;  %v628_v62 = vpack.c.bf16 %v91_v57, %v90_v56  ;;  %v110_v2 = vld [vmem:[%s1040_s1 + $0x2c0] sm:$0xff]  ;;  %vm421_vm3 = vcmask 80896  }
  0x27   :  { %652 = vmatpush3.bf16.msra.mxu1 %v651_v53  ;;  %551 = vmatprep.mubr.msk.f32.mxu1 %vm686_vm0, %v687_v60  ;;  %v21_v61 = vld [vmem:[%s1039_s0 + $0x30] sm:$0xff]  ;;  %v630_v63 = vpack.c.bf16 %v109_v59, %v108_v58  ;;  %v93_v1 = vld [vmem:[%s1040_s1 + $0x238] sm:$0xff]  ;;  %v111_v3 = vld [vmem:[%s1040_s1 + $0x2c8] sm:$0xff] }
  0x28   :  { %v92_v0 = vld [vmem:[%s1040_s1 + $0x230] sm:$0xff]  ;;  %v634_v5 = vpack.c.bf16 %v111_v3, %v110_v2  ;;  %v94_v6 = vld [vmem:[%s1040_s1 + $0x240] sm:$0xff]  ;;  %v95_v7 = vld [vmem:[%s1040_s1 + $0x248] sm:$0xff] }
  0x29   :  { %625 = vmatpush3.bf16.msra.mxu0 %v624_v54  ;;  %v632_v4 = vpack.c.bf16 %v93_v1, %v92_v0  ;;  %v112_v8 = vld [vmem:[%s1040_s1 + $0x2d0] sm:$0xff]  ;;  %v113_v9 = vld [vmem:[%s1040_s1 + $0x2d8] sm:$0xff]  ;;  %v636_v10 = vpack.c.bf16 %v95_v7, %v94_v6  ;;  %v114_v14 = vld [vmem:[%s1040_s1 + $0x2e0] sm:$0xff] }
  0x2a   :  { %627 = vmatprep.subr.bf16.mxu0 %v626_v55  ;;  %552 = vmatmul.mubr.msk.f32.vlgmr.msra.gmra.mrb[2].mxu1 %vm127_vm1, %v21_v61  ;;  %v638_v11 = vpack.c.bf16 %v113_v9, %v112_v8  ;;  %v96_v12 = vld [vmem:[%s1040_s1 + $0x250] sm:$0xff]  ;;  %v97_v13 = vld [vmem:[%s1040_s1 + $0x258] sm:$0xff]  ;;  %v115_v15 = vld [vmem:[%s1040_s1 + $0x2e8] sm:$0xff] }
  0x2b   :  { %v640_v16 = vpack.c.bf16 %v97_v13, %v96_v12  ;;  %v642_v17 = vpack.c.bf16 %v115_v15, %v114_v14  ;;  %v98_v18 = vld [vmem:[%s1040_s1 + $0x260] sm:$0xff]  ;;  %v99_v19 = vld [vmem:[%s1040_s1 + $0x268] sm:$0xff]  ;;  %v116_v20 = vld [vmem:[%s1040_s1 + $0x2f0] sm:$0xff] }
  0x2c   :  { %v117_v21 = vld [vmem:[%s1040_s1 + $0x2f8] sm:$0xff]  ;;  %v644_v22 = vpack.c.bf16 %v99_v19, %v98_v18  ;;  %v100_v24 = vld [vmem:[%s1040_s1 + $0x270] sm:$0xff]  ;;  %v19_v27 = vld [vmem:[%s1039_s0 + $0x20] sm:$0xff]  ;;  %s688_s0 = smov [#allocation2]  }
  0x2d   :  { %629 = vmatpush3.bf16.msra.mxu0 %v628_v62  ;;  %v646_v23 = vpack.c.bf16 %v117_v21, %v116_v20  ;;  %v101_v25 = vld [vmem:[%s1040_s1 + $0x278] sm:$0xff]  ;;  %v437_v29 = vld [vmem:[%s1041_s2] ss:$0 sm:$0xff]  ;;  %s429_s1 = sshll.u32 %s688_s0, 4  ;;  %s430_s1 = int_to_ptr.vmem [resolvable:$true] %s429_s1 }
  0x2e   :  { %631 = vmatprep.subr.bf16.mxu0 %v630_v63  ;;  %v648_v26 = vpack.c.bf16 %v101_v25, %v100_v24  ;;  %s661_s2 = scalar_lea.vmem %s430_s1, 128  ;;  %p666_p1 = scmp.lt.s32.totalorder %s430_s1, %s430_s1 }
  0x2f   :  { %p662_p0 = scmp.ne.s32.totalorder %s430_s1, %s661_s2  ;;  %p667_p2 = scmp.lt.s32.totalorder %s661_s2, %s661_s2 }
  0x31   :  { %633 = vmatpush3.bf16.msra.mxu0 %v632_v4  ;;  %p668_p3 = por %p667_p2, %p666_p1 }
  0x32   :  { %635 = vmatprep.subr.bf16.mxu0 %v634_v5 }
  0x33   :  { %p669_p4 = pnand %p668_p3, %p662_p0 }
  0x35   :  { %637 = vmatpush3.bf16.msra.mxu0 %v636_v10 }
  0x36   :  { %639 = vmatprep.subr.bf16.mxu0 %v638_v11 }
  0x39   :  { %641 = vmatpush3.bf16.msra.mxu0 %v640_v16 }
  0x3a   :  { %643 = vmatprep.subr.bf16.mxu0 %v642_v17 }
  0x3d   :  { %645 = vmatpush3.bf16.msra.mxu0 %v644_v22 }
  0x3e   :  { %647 = vmatprep.subr.bf16.mxu0 %v646_v23 }
  0x41   :  { %649 = vmatpush3.bf16.msra.mxu0 %v648_v26 }
  0x44   :  { %336 = vmatmul.mubr.f32.vlgmr.msra.gmra.mrb[2].mxu0 %v19_v27 }
  0xf7   :  { %v471_v28 = vpop.f32.mrb[0].mxu0 }
  0xf8   :  { %v472_v30 = vpop.f32.mrb[1].mxu0 }
  0xf9   :  { %v506_v31 = vpop.f32.mrb[0].mxu1  ;;  %v473_v32 = vadd.f32 %v472_v30, %v471_v28 }
  0xfa   :  { %v507_v33 = vpop.f32.mrb[1].mxu1 }
  0xfb   :  { %v508_v34 = vadd.f32 %v507_v33, %v506_v31  ;;  %v198_v35 = vadd.f32 %v473_v32, %v437_v29 }
  0xfd   :  { %v268_v36 = vadd.f32 %v508_v34, %v198_v35  ;;  %v407_v37 = vpop.f32.mrb[2].mxu1 }
  0xfe   :  { %v553_v38 = vpop.f32.mrb[3].mxu1 }
 0x117   :  { %v541_v39 = vpop.f32.mrb[2].mxu0 }
 0x118   :  { %v542_v40 = vpop.f32.mrb[3].mxu0 }
 0x119   :  { %v543_v41 = vadd.f32 %v542_v40, %v541_v39 }
 0x11b   :  { %v338_v42 = vadd.f32 %v543_v41, %v268_v36 }
 0x11d   :  { %v408_v43 = vadd.f32 %v407_v37, %v338_v42 }
 0x11f   :  { %vm411_vm2 = vcmp.gt.f32.partialorder %v408_v43, 0.0  ;;  %v412_v44 = vsub.f32 0.0, %v408_v43 }
 0x121   :  { %v413_v45 = vsel %vm411_vm2, %v412_v44, %v408_v43 }
 0x122   :  { %v414_v46 = vmul.f32 1.442695, %v413_v45 }
 0x124   :  { %657 = vpow2.f32 %v414_v46 }
 0x12e   :  { %v658_v47 = vpop.eup %657 }
 0x12f   :  { %v416_v48 = vadd.f32 1.0, %v658_v47 }
 0x131   :  { %659 = vrcp.f32 %v416_v48 }
 0x13b   :  { %v660_v49 = vpop.eup %659 }
 0x13c   :  { %v419_v50 = vmul.f32 %v660_v49, %v658_v47 }
 0x13e   :  { %v420_v51 = vsel %vm411_vm2, %v660_v49, %v419_v50 }
 0x13f   :  { %422 = vst.msk [vmem:[#allocation2] sm:$0xff] %vm421_vm3, %v420_v51 }
 0x140   :  { %672 = shalt.err (!%p669_p4)
}
 0x141   :  { %s673_s10 = scalar_lea.hbm %s1042_s3, 128 }
 0x142   :  { %p674_p5 = scmp.ne.s32.totalorder %s1042_s3, %s673_s10  ;;  %p677_p6 = scmp.lt.u32.totalorder %s673_s10, %s1042_s3 }
 0x144   :  { %p679_p7 = pnand %p677_p6, %p674_p5 }
 0x146   :  { %682 = shalt.err (!%p679_p7)
}
 0x147   :  { %432 = dma.vmem_to_hbm [thread:$0]  %s430_s1, 128, %s1042_s3, [#allocation3]  }
 0x148   :  { %683 = dma.done.wait [#allocation3], 128  }
 0x149   :  { %684 = vsyncadd [#allocation3], 4294967168 }
 0x14a   :  { %436 = vsyncpa [#allocation3], 1 }

</bundles_post_ra>
